<compile_context>
chip_gen: v5e
topology: v5e:2x2
jax: 0.10.0
libtpu: 0.0.40
codegen_flags: <defaults>
</compile_context>

<pallas_src>
import math
from functools import lru_cache, partial

import jax
import jax.numpy as jnp
from jax.experimental import pallas as pl
from jax.experimental.pallas import tpu as pltpu


_MIN_GRID_STEPS = 4  # keep both v7x TensorCores fed


# -----------------------------------------------------------------------------
# hardware-aware budgets & tiling helpers
# -----------------------------------------------------------------------------
@lru_cache(maxsize=None)
def _vmem_config():
    """Return (per-block VMEM budget, scoped vmem_limit_bytes), generation-aware."""
    cap = None
    try:
        cap = getattr(pltpu.get_tpu_info(), "vmem_capacity_bytes", None)
    except Exception:
        cap = None
    if cap is not None and cap > (80 << 20):
        return 12 << 20, 64 << 20          # v5e / v6e: 128 MiB physical VMEM
    return 6 << 20, 32 << 20               # v7x (64 MiB/TC) or unknown: conservative


def _c_tile_candidates(C):
    """Channel tiles: multiples of 128 dividing C, plus C itself (lane-dense stores)."""
    cands = {c for c in range(128, C, 128) if C % c == 0}
    cands.add(C)
    return sorted(cands)


def _row_tile_candidates(NT):
    """Row (frame) tiles: multiples of 8 dividing NT, plus NT itself."""
    cands = {r for r in range(8, NT, 8) if NT % r == 0}
    cands.add(NT)
    return sorted(cands)


def _segment_matrix(groups, group_size, dtype):
    """(groups*group_size, groups) matrix with column g = 1 on rows of group g, else 0.

    Exact 0/1 values are lossless in any dtype (bf16/f32); the 1/HW mean scale is
    applied to the small f32 accumulator inside the kernel instead.
    """
    k = groups * group_size
    rows = jax.lax.broadcasted_iota(jnp.int32, (k, groups), 0) // group_size
    cols = jax.lax.broadcasted_iota(jnp.int32, (k, groups), 1)
    return (rows == cols).astype(dtype)


# -----------------------------------------------------------------------------
# kernels
# -----------------------------------------------------------------------------
def _matmul_pool_kernel(x_ref, seg_ref, o_ref, *, inv_hw):
    # x_ref:   (row_tile, c_tile*HW)  frames-major feature, lane-dense & contiguous
    # seg_ref: (c_tile*HW, c_tile)    0/1 segment matrix (column c selects channel c)
    # o_ref:   (row_tile, c_tile)     pooled output, channels on the lane axis
    acc = jnp.dot(x_ref[...], seg_ref[...], preferred_element_type=jnp.float32)
    o_ref[...] = (acc * inv_hw).astype(o_ref.dtype)


def _matmul_pool_5d_kernel(x_ref, seg_ref, o_ref, *, inv_hw):
    # x_ref:   (1, c_tile, T*HW)   native conv3d layout, folded (t, h) on the lane axis
    # seg_ref: (T*HW, T)           0/1 segment matrix (column t selects frame t)
    # o_ref:   (1, c_tile, T)      pooled output already in the module's [N, C, T] layout
    acc = jnp.dot(x_ref[0], seg_ref[...], preferred_element_type=jnp.float32)
    o_ref[0] = (acc * inv_hw).astype(o_ref.dtype)


def _lane_reduce_kernel(x_ref, o_ref, *, pool_type):
    # x_ref: (row_tile, c_tile, HW);  o_ref: (row_tile, c_tile)
    x = x_ref[...]
    if pool_type == "mean":          # fallback only (segment matrix too large for VMEM)
        o_ref[...] = jnp.mean(x.astype(jnp.float32), axis=-1).astype(o_ref.dtype)
    else:                            # max: exact in the native dtype, no f32 round trip
        o_ref[...] = jnp.max(x, axis=-1).astype(o_ref.dtype)


def _lane_reduce_5d_kernel(x_ref, o_ref, *, pool_type):
    # x_ref: (1, c_tile, T, HW);  o_ref: (1, c_tile, T)
    x = x_ref[0]
    if pool_type == "mean":
        o_ref[0] = jnp.mean(x.astype(jnp.float32), axis=-1).astype(o_ref.dtype)
    else:
        o_ref[0] = jnp.max(x, axis=-1).astype(o_ref.dtype)


# -----------------------------------------------------------------------------
# pallas_call wrappers: frames-major [N*T, C, HW] -> [N*T, C]
# -----------------------------------------------------------------------------
def _run_mean_matmul_frames(x3, out_dtype):
    """MXU segment-matmul mean pool.  Returns None if the plan doesn't fit VMEM."""
    NT, C, HW = x3.shape
    itemsize = x3.dtype.itemsize
    block_budget, vmem_limit = _vmem_config()

    c_tile = None
    min_rows = min(8, NT)
    for cand in _c_tile_candidates(C):               # smallest first => smallest SEG
        k = cand * HW
        seg_bytes = k * cand * itemsize
        if seg_bytes <= block_budget and min_rows * k * itemsize <= block_budget:
            c_tile = cand
            break
    if c_tile is None:
        return None                                  # caller falls back to lane reduce

    K = c_tile * HW
    row_cands = _row_tile_candidates(NT)
    fitting_r = [r for r in row_cands if r * K * itemsize <= block_budget] or [min(row_cands)]
    row_tile = max(fitting_r)
    c_steps = C // c_tile
    while (NT // row_tile) * c_steps < _MIN_GRID_STEPS:
        smaller = [r for r in fitting_r if r < row_tile]
        if not smaller:
            break
        row_tile = max(smaller)

    x2 = x3.reshape(NT, C * HW)                      # contiguous: free reshape
    seg = _segment_matrix(c_tile, HW, x3.dtype)      # (K, c_tile)

    cost = pl.CostEstimate(
        flops=2 * NT * C * HW * c_tile,
        transcendentals=0,
        bytes_accessed=x3.size * itemsize + seg.size * itemsize
        + NT * C * jnp.dtype(out_dtype).itemsize,
    )
    return pl.pallas_call(
        partial(_matmul_pool_kernel, inv_hw=1.0 / HW),
        out_shape=jax.ShapeDtypeStruct((NT, C), out_dtype),
        grid_spec=pltpu.PrefetchScalarGridSpec(
            num_scalar_prefetch=0,
            grid=(NT // row_tile, C // c_tile),
            in_specs=[
                pl.BlockSpec((row_tile, K), lambda i, j: (i, j)),
                pl.BlockSpec((K, c_tile), lambda i, j: (0, 0)),   # constant: DMA'd once
            ],
            out_specs=pl.BlockSpec((row_tile, c_tile), lambda i, j: (i, j)),
        ),
        compiler_params=pltpu.CompilerParams(
            dimension_semantics=("parallel", "parallel"),
            vmem_limit_bytes=vmem_limit,
        ),
        cost_estimate=cost,
    )(x2, seg)


def _run_lane_reduce_frames(x3, pool_type, out_dtype):
    """Lane-axis reduce: used for max, and as the mean fallback."""
    NT, C, HW = x3.shape
    itemsize = x3.dtype.itemsize
    block_budget, vmem_limit = _vmem_config()
    hw_pad = int(pl.cdiv(HW, 128)) * 128             # lane padding of the minor dim
    c_cands = _c_tile_candidates(C)
    min_rows = min(8, NT)

    fitting_c = [c for c in c_cands if min_rows * c * hw_pad * itemsize <= block_budget]
    c_tile = max(fitting_c) if fitting_c else min(c_cands)
    bytes_per_row = c_tile * hw_pad * itemsize
    if min_rows * bytes_per_row > vmem_limit // 3:
        # TODO(synk): block too large to tile under scoped VMEM with the 128-multiple
        # channel constraint; fall back to a plain XLA reduction.
        pooled = (jnp.mean(x3.astype(jnp.float32), axis=-1) if pool_type == "mean"
                  else jnp.max(x3, axis=-1))
        return pooled.astype(out_dtype)

    row_cands = _row_tile_candidates(NT)
    fitting_r = [r for r in row_cands if r * bytes_per_row <= block_budget] or [min(row_cands)]
    row_tile = max(fitting_r)
    c_steps = C // c_tile
    while (NT // row_tile) * c_steps < _MIN_GRID_STEPS:
        smaller = [r for r in fitting_r if r < row_tile]
        if not smaller:
            break
        row_tile = max(smaller)

    cost = pl.CostEstimate(
        flops=NT * C * HW,
        transcendentals=0,
        bytes_accessed=x3.size * itemsize + NT * C * jnp.dtype(out_dtype).itemsize,
    )
    return pl.pallas_call(
        partial(_lane_reduce_kernel, pool_type=pool_type),
        out_shape=jax.ShapeDtypeStruct((NT, C), out_dtype),
        grid_spec=pltpu.PrefetchScalarGridSpec(
            num_scalar_prefetch=0,
            grid=(NT // row_tile, C // c_tile),
            in_specs=[pl.BlockSpec((row_tile, c_tile, HW), lambda i, j: (i, j, 0))],
            out_specs=pl.BlockSpec((row_tile, c_tile), lambda i, j: (i, j)),
        ),
        compiler_params=pltpu.CompilerParams(
            dimension_semantics=("parallel", "parallel"),
            vmem_limit_bytes=vmem_limit,
        ),
        cost_estimate=cost,
    )(x3)


def _pool_frames(x3, pool_type, out_dtype):
    if pool_type == "mean":
        out = _run_mean_matmul_frames(x3, out_dtype)
        if out is not None:
            return out
    return _run_lane_reduce_frames(x3, pool_type, out_dtype)


# -----------------------------------------------------------------------------
# pallas_call wrappers: native conv3d layout [N, C, T, HW] -> [N, C, T]
# -----------------------------------------------------------------------------
def _run_mean_matmul_5d(x4, out_dtype):
    N, C, T, HW = x4.shape
    itemsize = x4.dtype.itemsize
    block_budget, vmem_limit = _vmem_config()
    K = T * HW
    seg_bytes = K * T * itemsize
    c_cands = _c_tile_candidates(C)
    fitting_c = [c for c in c_cands if c * K * itemsize <= block_budget]
    if seg_bytes > block_budget or not fitting_c:
        return None                                   # caller falls back
    c_tile = max(fitting_c)
    while N * (C // c_tile) < _MIN_GRID_STEPS:
        smaller = [c for c in fitting_c if c < c_tile]
        if not smaller:
            break
        c_tile = max(smaller)

    x5 = x4.reshape(N, C, K)                          # contiguous: free reshape
    seg = _segment_matrix(T, HW, x4.dtype)            # (K, T)
    cost = pl.CostEstimate(
        flops=2 * N * C * K * T,
        transcendentals=0,
        bytes_accessed=x4.size * itemsize + seg.size * itemsize
        + N * C * T * jnp.dtype(out_dtype).itemsize,
    )
    return pl.pallas_call(
        partial(_matmul_pool_5d_kernel, inv_hw=1.0 / HW),
        out_shape=jax.ShapeDtypeStruct((N, C, T), out_dtype),
        grid_spec=pltpu.PrefetchScalarGridSpec(
            num_scalar_prefetch=0,
            grid=(N, C // c_tile),
            in_specs=[
                pl.BlockSpec((1, c_tile, K), lambda n, c: (n, c, 0)),
                pl.BlockSpec((K, T), lambda n, c: (0, 0)),        # constant: DMA'd once
            ],
            out_specs=pl.BlockSpec((1, c_tile, T), lambda n, c: (n, c, 0)),
        ),
        compiler_params=pltpu.CompilerParams(
            dimension_semantics=("parallel", "parallel"),
            vmem_limit_bytes=vmem_limit,
        ),
        cost_estimate=cost,
    )(x5, seg)


def _run_lane_reduce_5d(x4, pool_type, out_dtype):
    N, C, T, HW = x4.shape
    itemsize = x4.dtype.itemsize
    block_budget, vmem_limit = _vmem_config()
    hw_pad = int(pl.cdiv(HW, 128)) * 128
    c_cands = _c_tile_candidates(C)
    fitting_c = [c for c in c_cands if c * T * hw_pad * itemsize <= block_budget]
    c_tile = max(fitting_c) if fitting_c else min(c_cands)
    if c_tile * T * hw_pad * itemsize > vmem_limit // 3:
        pooled = (jnp.mean(x4.astype(jnp.float32), axis=-1) if pool_type == "mean"
                  else jnp.max(x4, axis=-1))
        return pooled.astype(out_dtype)
    while N * (C // c_tile) < _MIN_GRID_STEPS:
        smaller = [c for c in (fitting_c or c_cands) if c < c_tile]
        if not smaller:
            break
        c_tile = max(smaller)

    cost = pl.CostEstimate(
        flops=N * C * T * HW,
        transcendentals=0,
        bytes_accessed=x4.size * itemsize + N * C * T * jnp.dtype(out_dtype).itemsize,
    )
    return pl.pallas_call(
        partial(_lane_reduce_5d_kernel, pool_type=pool_type),
        out_shape=jax.ShapeDtypeStruct((N, C, T), out_dtype),
        grid_spec=pltpu.PrefetchScalarGridSpec(
            num_scalar_prefetch=0,
            grid=(N, C // c_tile),
            in_specs=[pl.BlockSpec((1, c_tile, T, HW), lambda n, c: (n, c, 0, 0))],
            out_specs=pl.BlockSpec((1, c_tile, T), lambda n, c: (n, c, 0)),
        ),
        compiler_params=pltpu.CompilerParams(
            dimension_semantics=("parallel", "parallel"),
            vmem_limit_bytes=vmem_limit,
        ),
        cost_estimate=cost,
    )(x4)


def _pool_5d(x4, pool_type, out_dtype):
    if pool_type == "mean":
        out = _run_mean_matmul_5d(x4, out_dtype)
        if out is not None:
            return out
    return _run_lane_reduce_5d(x4, pool_type, out_dtype)


# -----------------------------------------------------------------------------
# forward (mirrors PoolNeck.forward)
# -----------------------------------------------------------------------------
def pool_neck_forward(x, masks, clip_seg_num=None, pool_type="mean", need_pool=True):
    assert pool_type in ("mean", "max")
    feature = x
    if clip_seg_num is None:                              # dynamic_shape rule
        clip_seg_num = x.shape[0] // 2
    T = clip_seg_num
    assert masks.shape[-1] == T, f"masks last dim {masks.shape[-1]} != clip_seg_num {T}"
    out_dtype = feature.dtype
    mask = masks[:, 0:1, :].astype(out_dtype)             # [N, 1, T]

    if not need_pool:
        # need_pool=False returns the masked, unpooled 5D feature: pure reshape +
        # broadcast multiply, XLA is already optimal here (no kernel needed).
        if feature.ndim == 2:
            feat4 = feature[:, :, None, None]
        elif feature.ndim == 3:
            NT, C, P = feature.shape
            s = int(math.sqrt(P))
            assert s * s == P, "3D input last dim must be a perfect square"
            feat4 = feature.reshape(NT, C, s, s)
        elif feature.ndim == 5:
            Nb, C, Th, H, W = feature.shape
            feat4 = jnp.swapaxes(feature, 1, 2).reshape(Nb * Th, C, H, W)
        else:
            feat4 = feature
        NT, C, H, W = feat4.shape
        N = NT // T
        assert N * T == NT, "batch dim must be divisible by clip_seg_num"
        seg = jnp.swapaxes(feat4.reshape(N, T, C, H, W), 1, 2)      # [N, C, T, H, W]
        return seg * mask[:, :, :, None, None]

    if feature.ndim == 5:
        # conv3d-style [N, C, T, H, W]: pool directly in the native layout (the
        # BlockSpec index_map does the "transpose"); output stays [N, C, T].
        N, C, Th, H, W = feature.shape
        assert Th == T, f"5D time dim {Th} != clip_seg_num {T}"
        pooled_nct = _pool_5d(feature.reshape(N, C, Th, H * W), pool_type, out_dtype)
        return pooled_nct * mask

    if feature.ndim == 2:                                 # [N*T, C]: 1x1 pooling is identity
        NT, C = feature.shape
        N = NT // T
        assert N * T == NT, "batch dim must be divisible by clip_seg_num"
        return jnp.swapaxes(feature.reshape(N, T, C), 1, 2) * mask
    elif feature.ndim == 3:                               # [N*T, C, P] (P spatial positions)
        NT, C, P = feature.shape
        x3 = feature                                      # pooling over P works for any P
    elif feature.ndim == 4:                               # [N*T, C, H, W]
        NT, C, H, W = feature.shape
        x3 = feature.reshape(NT, C, H * W)
    else:
        raise ValueError(f"unsupported feature rank {feature.ndim}")

    N = NT // T
    assert N * T == NT, "batch dim must be divisible by clip_seg_num"
    pooled_fc = _pool_frames(x3, pool_type, out_dtype)    # [N*T, C], lane-dense
    # tiny (~1/HW of kernel traffic): reshape + transpose + mask in XLA
    return jnp.swapaxes(pooled_fc.reshape(N, T, C), 1, 2) * mask


# -----------------------------------------------------------------------------
# pure-JAX references (mirror the PyTorch forward)
# -----------------------------------------------------------------------------
def _reference_frames(x3, masks, T, pool_type):
    NT, C, HW = x3.shape
    N = NT // T
    pooled = jnp.mean(x3, axis=-1) if pool_type == "mean" else jnp.max(x3, axis=-1)
    return pooled.reshape(N, T, C).transpose(0, 2, 1) * masks[:, 0:1, :]


def _reference_4d(x, masks, T, pool_type):
    NT, C, H, W = x.shape
    return _reference_frames(x.reshape(NT, C, H * W), masks, T, pool_type)


def _reference_5d(x, masks, T, pool_type):
    N, C, Th, H, W = x.shape
    xt = jnp.swapaxes(x, 1, 2).reshape(-1, C, H, W)
    return _reference_4d(xt, masks, T, pool_type)


if __name__ == "__main__":
    key = jax.random.PRNGKey(0)
    kx, km, k5, k3 = jax.random.split(key, 4)

    N, T, C, H, W = 2, 8, 4, 16, 16
    x4 = jax.random.normal(kx, (N * T, C, H, W), dtype=jnp.float32)
    masks = jax.random.bernoulli(km, 0.75, (N, 1, T)).astype(jnp.float32)

    # MXU matmuls may run at reduced internal precision for f32 -> loose-ish tolerance
    # for the mean path (a layout/index bug would produce O(1) errors).
    MEAN_TOL = dict(atol=2e-3, rtol=2e-3)

    # 4D path [N*T, C, H, W], dynamic clip_seg_num, mean -> MXU segment-matmul kernel
    out = jax.block_until_ready(pool_neck_forward(x4, masks, clip_seg_num=None, pool_type="mean"))
    ref = _reference_4d(x4, masks, T, "mean")
    assert out.shape == (N, C, T), f"bad shape {out.shape}"
    assert jnp.allclose(out, ref, **MEAN_TOL), "4D mean mismatch"

    # 4D path, max -> lane-reduce kernel (native dtype, exact)
    out_max = jax.block_until_ready(pool_neck_forward(x4, masks, clip_seg_num=T, pool_type="max"))
    ref_max = _reference_4d(x4, masks, T, "max")
    assert jnp.allclose(out_max, ref_max, atol=1e-6, rtol=1e-6), "4D max mismatch"

    # 3D path [N*T, C, P] with P = 7*7 = 49 (non-128-multiple spatial -> folded DMA)
    x3 = jax.random.normal(k3, (N * T, C, 49), dtype=jnp.float32)
    out3 = jax.block_until_ready(pool_neck_forward(x3, masks, clip_seg_num=T, pool_type="mean"))
    ref3 = _reference_frames(x3, masks, T, "mean")
    assert out3.shape == (N, C, T), f"bad 3D shape {out3.shape}"
    assert jnp.allclose(out3, ref3, **MEAN_TOL), "3D mean mismatch"

    # 5D conv3d path [N, C, T, H, W] -> [N, C, T], native-layout kernels
    x5 = jax.random.normal(k5, (N, C, T, 8, 8), dtype=jnp.float32)
    out5 = jax.block_until_ready(pool_neck_forward(x5, masks, clip_seg_num=T, pool_type="mean"))
    ref5 = _reference_5d(x5, masks, T, "mean")
    assert out5.shape == (N, C, T), f"bad 5D shape {out5.shape}"
    assert jnp.allclose(out5, ref5, **MEAN_TOL), "5D mean mismatch"

    out5m = jax.block_until_ready(pool_neck_forward(x5, masks, clip_seg_num=T, pool_type="max"))
    ref5m = _reference_5d(x5, masks, T, "max")
    assert jnp.allclose(out5m, ref5m, atol=1e-6, rtol=1e-6), "5D max mismatch"

    # 2D path [N*T, C]: 1x1 "pooling" is the identity (pure XLA reshape/transpose/mask)
    x2 = x4[:, :, 0, 0]
    out2 = jax.block_until_ready(pool_neck_forward(x2, masks, clip_seg_num=T, pool_type="mean"))
    assert out2.shape == (N, C, T), f"bad 2D shape {out2.shape}"

    print("KERNEL_OK")
</pallas_src>

<mosaic_0001>
module attributes {stable_mosaic.version = 11 : i64} {
  func.func @_matmul_pool_kernel(%arg0: i32, %arg1: i32, %arg2: memref<8x1024xf32, #tpu.memory_space<vmem>>, %arg3: memref<1024x4xf32, #tpu.memory_space<vmem>>, %arg4: memref<8x4xf32, #tpu.memory_space<vmem>>) attributes {dimension_semantics = [#tpu.dimension_semantics<parallel>, #tpu.dimension_semantics<parallel>], iteration_bounds = array<i64: 2, 1>, scalar_prefetch = 0 : i64, scratch_operands = 0 : i64, tpu.core_type = #tpu.core_type<tc>, window_params = [{transform_indices = @transform_0, window_bounds = array<i64: 8, 1024>}, {pipeline_mode = #tpu.pipeline_mode<synchronous>, transform_indices = @transform_1, window_bounds = array<i64: 1024, 4>}, {transform_indices = @transform_2, window_bounds = array<i64: 8, 4>}]} {
    %c0 = arith.constant 0 : index
    %c0_0 = arith.constant 0 : index
    %0 = vector.load %arg2[%c0, %c0_0] : memref<8x1024xf32, #tpu.memory_space<vmem>>, vector<8x1024xf32>
    %c0_1 = arith.constant 0 : index
    %c0_2 = arith.constant 0 : index
    %1 = vector.load %arg3[%c0_1, %c0_2] : memref<1024x4xf32, #tpu.memory_space<vmem>>, vector<1024x4xf32>
    %cst = arith.constant dense<0.000000e+00> : vector<8x4xf32>
    %2 = tpu.matmul %0, %1, %cst {dimension_numbers = #tpu.dot_dimension_numbers<[1], [0], [0], [1], [0, 0, 1, 1], [], []>} : vector<8x1024xf32>, vector<1024x4xf32>, vector<8x4xf32> -> vector<8x4xf32>
    %cst_3 = arith.constant 3.906250e-03 : f32
    %3 = vector.broadcast %cst_3 : f32 to vector<8x4xf32>
    %4 = arith.mulf %2, %3 : vector<8x4xf32>
    %c0_4 = arith.constant 0 : index
    %c0_5 = arith.constant 0 : index
    %5 = vector.load %arg4[%c0_4, %c0_5] : memref<8x4xf32, #tpu.memory_space<vmem>>, vector<8x4xf32>
    tpu.vector_store %arg4[%c0_4, %c0_5], %4 {strides = array<i32>} : memref<8x4xf32, #tpu.memory_space<vmem>>, vector<8x4xf32>,
    return
  }
  func.func @transform_0(%arg0: i32, %arg1: i32) -> (i32, i32) {
    %c0_i32 = arith.constant 0 : i32
    return %arg0, %arg1 : i32, i32
  }
  func.func @transform_1(%arg0: i32, %arg1: i32) -> (i32, i32) {
    %c0_i32 = arith.constant 0 : i32
    %c0_i32_0 = arith.constant 0 : i32
    %c0_i32_1 = arith.constant 0 : i32
    return %c0_i32, %c0_i32_0 : i32, i32
  }
  func.func @transform_2(%arg0: i32, %arg1: i32) -> (i32, i32) {
    %c0_i32 = arith.constant 0 : i32
    return %arg0, %arg1 : i32, i32
  }
}

</mosaic_0001>

<bundles_post_ra>
// kernel: tpu_custom_call.1
= control target key start
LH: loop header
LB: loop body
LE: loop exit
PB: predicated region body
PF: predicated region fallthrough
CT: control target
= control target key end

     0   :  { %s628_s9 = smov 0   ;;  %s630_s10 = smov 0   ;;  %s1065_s0 = inlined_call_operand.vmem [shape: f32[16,1024], index: 0, kind: input, shape index: {}]   ;;  %s1066_s1 = inlined_call_operand.vmem [shape: f32[1024,4], index: 1, kind: input, shape index: {}]   ;;  %s1067_s2 = inlined_call_operand.vmem [shape: f32[16,4], index: 2, kind: output, shape index: {}]  }
   0x1   :  { %s632_s11 = smov 0  }
   0x2 LB: > { %s24_s12 = sadd.s32 1, %s607_s10  ;;  %p558_p0 = scmp.ge.s32.totalorder %s611_s11, 1  ;;  %s611_s11 = sphi %s632_s11, %s12_s11   ;;  %s607_s10 = sphi %s630_s10, %s1069_s10   ;;  %s603_s9 = sphi %s628_s9, %s1068_s9  }
   0x3   : > { %p26_p1 = scmp.ge.s32.totalorder %s24_s12, 2  ;;  %p133_p2 = scmp.lt.s32.totalorder %s611_s11, 3 }
   0x5   : > { %s1071_s12 = smov (%p26_p1, %s24_s12), 0  ;;  %p134_p3 = pnand %p558_p0, %p133_p2 }
   0x6   : > { %p162_p4 = scmp.lt.s32.totalorder (!%p134_p3), %s603_s9, 1 }
   0x7   : > { %137 = sbr.rel (%p134_p3) target bundleno = 218 (0xda), region = 28 }
   0xc   : > { %v201_v0 = vld [vmem:[%s1066_s1 + $0x78] sm:$0xff]  ;;  %v200_v2 = vld [vmem:[%s1066_s1 + $0x70] sm:$0xff]  ;;  %v199_v6 = vld [vmem:[%s1066_s1 + $0x68] sm:$0xff]  ;;  %s1073_s9 = smov (!%p162_p4, %s603_s9), 1  ;;  %vm475_vm0 = vcmask 31744  }
   0xd   : > { %v233_v1 = vld [vmem:[%s1066_s1 + $0x178] sm:$0xff]  ;;  %314 = vmatpush.msra.mxu0 %v201_v0  ;;  %v232_v4 = vld [vmem:[%s1066_s1 + $0x170] sm:$0xff]  ;;  %v231_v8 = vld [vmem:[%s1066_s1 + $0x168] sm:$0xff]  ;;  %s564_s13 = sshll.u32 %s1073_s9, 6 }
   0xe   : > { %354 = vmatpush.msra.mxu2 %v233_v1  ;;  %v217_v3 = vld [vmem:[%s1066_s1 + $0xf8] sm:$0xff]  ;;  %v216_v7 = vld [vmem:[%s1066_s1 + $0xf0] sm:$0xff]  ;;  %v215_v10 = vld [vmem:[%s1066_s1 + $0xe8] sm:$0xff]  ;;  %s964_s28 = scalar_lea.vmem %s1065_s0, %s564_s13 }
   0xf   : > { %v249_v5 = vld [vmem:[%s1066_s1 + $0x1f8] sm:$0xff]  ;;  %334 = vmatpush.msra.mxu1 %v217_v3  ;;  %315 = vmatpush.msra.mxu0 %v200_v2  ;;  %v248_v9 = vld [vmem:[%s1066_s1 + $0x1f0] sm:$0xff]  ;;  %v198_v11 = vld [vmem:[%s1066_s1 + $0x60] sm:$0xff] }
  0x10   : > { %374 = vmatpush.msra.mxu3 %v249_v5  ;;  %355 = vmatpush.msra.mxu2 %v232_v4  ;;  %v230_v12 = vld [vmem:[%s1066_s1 + $0x160] sm:$0xff]  ;;  %v247_v13 = vld [vmem:[%s1066_s1 + $0x1e8] sm:$0xff]  ;;  %v197_v16 = vld [vmem:[%s1066_s1 + $0x58] sm:$0xff] }
  0x11   : > { %335 = vmatpush.msra.mxu1 %v216_v7  ;;  %316 = vmatpush.msra.mxu0 %v199_v6  ;;  %v214_v14 = vld [vmem:[%s1066_s1 + $0xe0] sm:$0xff]  ;;  %v229_v17 = vld [vmem:[%s1066_s1 + $0x158] sm:$0xff]  ;;  %v196_v20 = vld [vmem:[%s1066_s1 + $0x50] sm:$0xff] }
  0x12   : > { %375 = vmatpush.msra.mxu3 %v248_v9  ;;  %356 = vmatpush.msra.mxu2 %v231_v8  ;;  %v246_v15 = vld [vmem:[%s1066_s1 + $0x1e0] sm:$0xff]  ;;  %v213_v18 = vld [vmem:[%s1066_s1 + $0xd8] sm:$0xff]  ;;  %v228_v21 = vld [vmem:[%s1066_s1 + $0x150] sm:$0xff] }
  0x13   : > { %336 = vmatpush.msra.mxu1 %v215_v10  ;;  %317 = vmatpush.msra.mxu0 %v198_v11  ;;  %v245_v19 = vld [vmem:[%s1066_s1 + $0x1d8] sm:$0xff]  ;;  %v212_v22 = vld [vmem:[%s1066_s1 + $0xd0] sm:$0xff]  ;;  %v195_v24 = vld [vmem:[%s1066_s1 + $0x48] sm:$0xff] }
  0x14   : > { %376 = vmatpush.msra.mxu3 %v247_v13  ;;  %357 = vmatpush.msra.mxu2 %v230_v12  ;;  %v244_v23 = vld [vmem:[%s1066_s1 + $0x1d0] sm:$0xff]  ;;  %v227_v25 = vld [vmem:[%s1066_s1 + $0x148] sm:$0xff]  ;;  %v194_v28 = vld [vmem:[%s1066_s1 + $0x40] sm:$0xff] }
  0x15   : > { %337 = vmatpush.msra.mxu1 %v214_v14  ;;  %318 = vmatpush.msra.mxu0 %v197_v16  ;;  %v211_v26 = vld [vmem:[%s1066_s1 + $0xc8] sm:$0xff]  ;;  %v226_v29 = vld [vmem:[%s1066_s1 + $0x140] sm:$0xff]  ;;  %v193_v32 = vld [vmem:[%s1066_s1 + $0x38] sm:$0xff] }
  0x16   : > { %377 = vmatpush.msra.mxu3 %v246_v15  ;;  %358 = vmatpush.msra.mxu2 %v229_v17  ;;  %v243_v27 = vld [vmem:[%s1066_s1 + $0x1c8] sm:$0xff]  ;;  %v210_v30 = vld [vmem:[%s1066_s1 + $0xc0] sm:$0xff]  ;;  %v225_v33 = vld [vmem:[%s1066_s1 + $0x138] sm:$0xff] }
  0x17   : > { %338 = vmatpush.msra.mxu1 %v213_v18  ;;  %319 = vmatpush.msra.mxu0 %v196_v20  ;;  %v242_v31 = vld [vmem:[%s1066_s1 + $0x1c0] sm:$0xff]  ;;  %v209_v34 = vld [vmem:[%s1066_s1 + $0xb8] sm:$0xff]  ;;  %v192_v36 = vld [vmem:[%s1066_s1 + $0x30] sm:$0xff] }
  0x18   : > { %378 = vmatpush.msra.mxu3 %v245_v19  ;;  %359 = vmatpush.msra.mxu2 %v228_v21  ;;  %v241_v35 = vld [vmem:[%s1066_s1 + $0x1b8] sm:$0xff]  ;;  %v224_v37 = vld [vmem:[%s1066_s1 + $0x130] sm:$0xff]  ;;  %v191_v40 = vld [vmem:[%s1066_s1 + $0x28] sm:$0xff] }
  0x19   : > { %339 = vmatpush.msra.mxu1 %v212_v22  ;;  %320 = vmatpush.msra.mxu0 %v195_v24  ;;  %v208_v38 = vld [vmem:[%s1066_s1 + $0xb0] sm:$0xff]  ;;  %v223_v41 = vld [vmem:[%s1066_s1 + $0x128] sm:$0xff]  ;;  %v190_v44 = vld [vmem:[%s1066_s1 + $0x20] sm:$0xff] }
  0x1a   : > { %379 = vmatpush.msra.mxu3 %v244_v23  ;;  %360 = vmatpush.msra.mxu2 %v227_v25  ;;  %v240_v39 = vld [vmem:[%s1066_s1 + $0x1b0] sm:$0xff]  ;;  %v207_v42 = vld [vmem:[%s1066_s1 + $0xa8] sm:$0xff]  ;;  %v222_v45 = vld [vmem:[%s1066_s1 + $0x120] sm:$0xff] }
  0x1b   : > { %340 = vmatpush.msra.mxu1 %v211_v26  ;;  %321 = vmatpush.msra.mxu0 %v194_v28  ;;  %v239_v43 = vld [vmem:[%s1066_s1 + $0x1a8] sm:$0xff]  ;;  %v206_v46 = vld [vmem:[%s1066_s1 + $0xa0] sm:$0xff]  ;;  %v189_v48 = vld [vmem:[%s1066_s1 + $0x18] sm:$0xff] }
  0x1c   : > { %380 = vmatpush.msra.mxu3 %v243_v27  ;;  %361 = vmatpush.msra.mxu2 %v226_v29  ;;  %v238_v47 = vld [vmem:[%s1066_s1 + $0x1a0] sm:$0xff]  ;;  %v221_v49 = vld [vmem:[%s1066_s1 + $0x118] sm:$0xff]  ;;  %v188_v52 = vld [vmem:[%s1066_s1 + $0x10] sm:$0xff] }
  0x1d   : > { %341 = vmatpush.msra.mxu1 %v210_v30  ;;  %322 = vmatpush.msra.mxu0 %v193_v32  ;;  %v205_v50 = vld [vmem:[%s1066_s1 + $0x98] sm:$0xff]  ;;  %v220_v53 = vld [vmem:[%s1066_s1 + $0x110] sm:$0xff]  ;;  %v187_v56 = vld [vmem:[%s1066_s1 + $0x8] sm:$0xff] }
  0x1e   : > { %381 = vmatpush.msra.mxu3 %v242_v31  ;;  %362 = vmatpush.msra.mxu2 %v225_v33  ;;  %v237_v51 = vld [vmem:[%s1066_s1 + $0x198] sm:$0xff]  ;;  %v204_v54 = vld [vmem:[%s1066_s1 + $0x90] sm:$0xff]  ;;  %v219_v57 = vld [vmem:[%s1066_s1 + $0x108] sm:$0xff] }
  0x1f   : > { %342 = vmatpush.msra.mxu1 %v209_v34  ;;  %323 = vmatpush.msra.mxu0 %v192_v36  ;;  %v236_v55 = vld [vmem:[%s1066_s1 + $0x190] sm:$0xff]  ;;  %v203_v58 = vld [vmem:[%s1066_s1 + $0x88] sm:$0xff]  ;;  %v186_v60 = vld [vmem:[%s1066_s1] sm:$0xff] }
  0x20   : > { %382 = vmatpush.msra.mxu3 %v241_v35  ;;  %363 = vmatpush.msra.mxu2 %v224_v37  ;;  %v235_v59 = vld [vmem:[%s1066_s1 + $0x188] sm:$0xff]  ;;  %v218_v61 = vld [vmem:[%s1066_s1 + $0x100] sm:$0xff]  ;;  %v265_v62 = vld [vmem:[%s1066_s1 + $0x278] sm:$0xff] }
  0x21   : > { %343 = vmatpush.msra.mxu1 %v208_v38  ;;  %324 = vmatpush.msra.mxu0 %v191_v40  ;;  %v297_v63 = vld [vmem:[%s1066_s1 + $0x378] sm:$0xff]  ;;  %v202_v0 = vld [vmem:[%s1066_s1 + $0x80] sm:$0xff]  ;;  %v264_v2 = vld [vmem:[%s1066_s1 + $0x270] sm:$0xff] }
  0x22   : > { %383 = vmatpush.msra.mxu3 %v240_v39  ;;  %364 = vmatpush.msra.mxu2 %v223_v41  ;;  %v234_v1 = vld [vmem:[%s1066_s1 + $0x180] sm:$0xff]  ;;  %v281_v3 = vld [vmem:[%s1066_s1 + $0x2f8] sm:$0xff]  ;;  %v296_v4 = vld [vmem:[%s1066_s1 + $0x370] sm:$0xff] }
  0x23   : > { %344 = vmatpush.msra.mxu1 %v207_v42  ;;  %325 = vmatpush.msra.mxu0 %v190_v44  ;;  %v313_v5 = vld [vmem:[%s1066_s1 + $0x3f8] sm:$0xff]  ;;  %v263_v6 = vld [vmem:[%s1066_s1 + $0x268] sm:$0xff]  ;;  %v280_v7 = vld [vmem:[%s1066_s1 + $0x2f0] sm:$0xff] }
  0x24   : > { %384 = vmatpush.msra.mxu3 %v239_v43  ;;  %365 = vmatpush.msra.mxu2 %v222_v45  ;;  %v295_v8 = vld [vmem:[%s1066_s1 + $0x368] sm:$0xff]  ;;  %v312_v9 = vld [vmem:[%s1066_s1 + $0x3f0] sm:$0xff]  ;;  %v262_v10 = vld [vmem:[%s1066_s1 + $0x260] sm:$0xff] }
  0x25   : > { %345 = vmatpush.msra.mxu1 %v206_v46  ;;  %326 = vmatpush.msra.mxu0 %v189_v48  ;;  %v279_v11 = vld [vmem:[%s1066_s1 + $0x2e8] sm:$0xff]  ;;  %v294_v12 = vld [vmem:[%s1066_s1 + $0x360] sm:$0xff]  ;;  %v261_v14 = vld [vmem:[%s1066_s1 + $0x258] sm:$0xff] }
  0x26   : > { %385 = vmatpush.msra.mxu3 %v238_v47  ;;  %366 = vmatpush.msra.mxu2 %v221_v49  ;;  %v311_v13 = vld [vmem:[%s1066_s1 + $0x3e8] sm:$0xff]  ;;  %v278_v15 = vld [vmem:[%s1066_s1 + $0x2e0] sm:$0xff]  ;;  %v293_v16 = vld [vmem:[%s1066_s1 + $0x358] sm:$0xff] }
  0x27   : > { %346 = vmatpush.msra.mxu1 %v205_v50  ;;  %327 = vmatpush.msra.mxu0 %v188_v52  ;;  %v310_v17 = vld [vmem:[%s1066_s1 + $0x3e0] sm:$0xff]  ;;  %v260_v18 = vld [vmem:[%s1066_s1 + $0x250] sm:$0xff]  ;;  %v277_v19 = vld [vmem:[%s1066_s1 + $0x2d8] sm:$0xff] }
  0x28   : > { %386 = vmatpush.msra.mxu3 %v237_v51  ;;  %367 = vmatpush.msra.mxu2 %v220_v53  ;;  %v292_v20 = vld [vmem:[%s1066_s1 + $0x350] sm:$0xff]  ;;  %v309_v21 = vld [vmem:[%s1066_s1 + $0x3d8] sm:$0xff]  ;;  %v259_v22 = vld [vmem:[%s1066_s1 + $0x248] sm:$0xff] }
  0x29   : > { %347 = vmatpush.msra.mxu1 %v204_v54  ;;  %328 = vmatpush.msra.mxu0 %v187_v56  ;;  %v276_v23 = vld [vmem:[%s1066_s1 + $0x2d0] sm:$0xff]  ;;  %v291_v24 = vld [vmem:[%s1066_s1 + $0x348] sm:$0xff]  ;;  %v258_v26 = vld [vmem:[%s1066_s1 + $0x240] sm:$0xff] }
  0x2a   : > { %387 = vmatpush.msra.mxu3 %v236_v55  ;;  %368 = vmatpush.msra.mxu2 %v219_v57  ;;  %v308_v25 = vld [vmem:[%s1066_s1 + $0x3d0] sm:$0xff]  ;;  %v275_v27 = vld [vmem:[%s1066_s1 + $0x2c8] sm:$0xff]  ;;  %v290_v28 = vld [vmem:[%s1066_s1 + $0x340] sm:$0xff] }
  0x2b   : > { %348 = vmatpush.msra.mxu1 %v203_v58  ;;  %329 = vmatpush.msra.mxu0 %v186_v60  ;;  %v307_v29 = vld [vmem:[%s1066_s1 + $0x3c8] sm:$0xff]  ;;  %v257_v30 = vld [vmem:[%s1066_s1 + $0x238] sm:$0xff]  ;;  %v274_v31 = vld [vmem:[%s1066_s1 + $0x2c0] sm:$0xff] }
  0x2c   : > { %388 = vmatpush.msra.mxu3 %v235_v59  ;;  %369 = vmatpush.msra.mxu2 %v218_v61  ;;  %v289_v32 = vld [vmem:[%s1066_s1 + $0x338] sm:$0xff]  ;;  %v306_v33 = vld [vmem:[%s1066_s1 + $0x3c0] sm:$0xff]  ;;  %v256_v34 = vld [vmem:[%s1066_s1 + $0x230] sm:$0xff] }
  0x2d   : > { %394 = vmatpush.msrb.mxu0 %v265_v62  ;;  %349 = vmatpush.msra.mxu1 %v202_v0  ;;  %v273_v35 = vld [vmem:[%s1066_s1 + $0x2b8] sm:$0xff]  ;;  %v288_v36 = vld [vmem:[%s1066_s1 + $0x330] sm:$0xff]  ;;  %v255_v38 = vld [vmem:[%s1066_s1 + $0x228] sm:$0xff] }
  0x2e   : > { %434 = vmatpush.msrb.mxu2 %v297_v63  ;;  %389 = vmatpush.msra.mxu3 %v234_v1  ;;  %v305_v37 = vld [vmem:[%s1066_s1 + $0x3b8] sm:$0xff]  ;;  %v272_v39 = vld [vmem:[%s1066_s1 + $0x2b0] sm:$0xff]  ;;  %v287_v40 = vld [vmem:[%s1066_s1 + $0x328] sm:$0xff] }
  0x2f   : > { %395 = vmatpush.msrb.mxu0 %v264_v2  ;;  %414 = vmatpush.msrb.mxu1 %v281_v3  ;;  %v304_v41 = vld [vmem:[%s1066_s1 + $0x3b0] sm:$0xff]  ;;  %v254_v43 = vld [vmem:[%s1066_s1 + $0x220] sm:$0xff]  ;;  %v271_v44 = vld [vmem:[%s1066_s1 + $0x2a8] sm:$0xff] }
  0x30   : > { %435 = vmatpush.msrb.mxu2 %v296_v4  ;;  %454 = vmatpush.msrb.mxu3 %v313_v5  ;;  %v180_v42 = vld [vmem:[%s964_s28 + $0x10] sm:$0xff]  ;;  %v286_v45 = vld [vmem:[%s1066_s1 + $0x320] sm:$0xff]  ;;  %v303_v46 = vld [vmem:[%s1066_s1 + $0x3a8] sm:$0xff] }
  0x31   : > { %396 = vmatpush.msrb.mxu0 %v263_v6  ;;  %415 = vmatpush.msrb.mxu1 %v280_v7  ;;  %v178_v47 = vld [vmem:[%s964_s28] sm:$0xff]  ;;  %v181_v48 = vld [vmem:[%s964_s28 + $0x18] sm:$0xff]  ;;  %v179_v53 = vld [vmem:[%s964_s28 + $0x8] sm:$0xff] }
  0x32   : > { %436 = vmatpush.msrb.mxu2 %v295_v8  ;;  %455 = vmatpush.msrb.mxu3 %v312_v9  ;;  %v253_v49 = vld [vmem:[%s1066_s1 + $0x218] sm:$0xff]  ;;  %v270_v50 = vld [vmem:[%s1066_s1 + $0x2a0] sm:$0xff]  ;;  %v252_v54 = vld [vmem:[%s1066_s1 + $0x210] sm:$0xff] }
  0x33   : > { %397 = vmatpush.msrb.mxu0 %v262_v10  ;;  %416 = vmatpush.msrb.mxu1 %v279_v11  ;;  %v285_v51 = vld [vmem:[%s1066_s1 + $0x318] sm:$0xff]  ;;  %v302_v52 = vld [vmem:[%s1066_s1 + $0x3a0] sm:$0xff]  ;;  %v284_v56 = vld [vmem:[%s1066_s1 + $0x310] sm:$0xff] }
  0x34   : > { %437 = vmatpush.msrb.mxu2 %v294_v12  ;;  %456 = vmatpush.msrb.mxu3 %v311_v13  ;;  %v269_v55 = vld [vmem:[%s1066_s1 + $0x298] sm:$0xff]  ;;  %v251_v58 = vld [vmem:[%s1066_s1 + $0x208] sm:$0xff]  ;;  %v268_v59 = vld [vmem:[%s1066_s1 + $0x290] sm:$0xff] }
  0x35   : > { %398 = vmatpush.msrb.mxu0 %v261_v14  ;;  %417 = vmatpush.msrb.mxu1 %v278_v15  ;;  %v301_v57 = vld [vmem:[%s1066_s1 + $0x398] sm:$0xff]  ;;  %v283_v60 = vld [vmem:[%s1066_s1 + $0x308] sm:$0xff]  ;;  %v300_v61 = vld [vmem:[%s1066_s1 + $0x390] sm:$0xff] }
  0x36   : > { %438 = vmatpush.msrb.mxu2 %v293_v16  ;;  %457 = vmatpush.msrb.mxu3 %v310_v17  ;;  %v250_v62 = vld [vmem:[%s1066_s1 + $0x200] sm:$0xff]  ;;  %v267_v63 = vld [vmem:[%s1066_s1 + $0x288] sm:$0xff]  ;;  %v184_v3 = vld [vmem:[%s964_s28 + $0x30] sm:$0xff] }
  0x37   : > { %399 = vmatpush.msrb.mxu0 %v260_v18  ;;  %418 = vmatpush.msrb.mxu1 %v277_v19  ;;  %v282_v0 = vld [vmem:[%s1066_s1 + $0x300] sm:$0xff]  ;;  %v299_v1 = vld [vmem:[%s1066_s1 + $0x388] sm:$0xff]  ;;  %v185_v7 = vld [vmem:[%s964_s28 + $0x38] sm:$0xff] }
  0x38   : > { %439 = vmatpush.msrb.mxu2 %v292_v20  ;;  %458 = vmatpush.msrb.mxu3 %v309_v21  ;;  %v182_v2 = vld [vmem:[%s964_s28 + $0x20] sm:$0xff]  ;;  %v183_v6 = vld [vmem:[%s964_s28 + $0x28] sm:$0xff]  ;;  %s561_s28 = sshll.u32 %s1073_s9, 3 }
  0x39   : > { %400 = vmatpush.msrb.mxu0 %v259_v22  ;;  %419 = vmatpush.msrb.mxu1 %v276_v23  ;;  %v266_v4 = vld [vmem:[%s1066_s1 + $0x280] sm:$0xff]  ;;  %s177_s13 = scalar_lea.vmem %s1067_s2, %s561_s28 }
  0x3a   : > { %440 = vmatpush.msrb.mxu2 %v291_v24  ;;  %459 = vmatpush.msrb.mxu3 %v308_v25  ;;  %v298_v5 = vld [vmem:[%s1066_s1 + $0x380] sm:$0xff] }
  0x3b   : > { %401 = vmatpush.msrb.mxu0 %v258_v26  ;;  %420 = vmatpush.msrb.mxu1 %v275_v27 }
  0x3c   : > { %441 = vmatpush.msrb.mxu2 %v290_v28  ;;  %460 = vmatpush.msrb.mxu3 %v307_v29 }
  0x3d   : > { %402 = vmatpush.msrb.mxu0 %v257_v30  ;;  %421 = vmatpush.msrb.mxu1 %v274_v31 }
  0x3e   : > { %442 = vmatpush.msrb.mxu2 %v289_v32  ;;  %461 = vmatpush.msrb.mxu3 %v306_v33 }
  0x3f   : > { %403 = vmatpush.msrb.mxu0 %v256_v34  ;;  %422 = vmatpush.msrb.mxu1 %v273_v35 }
  0x40   : > { %443 = vmatpush.msrb.mxu2 %v288_v36  ;;  %462 = vmatpush.msrb.mxu3 %v305_v37 }
  0x41   : > { %404 = vmatpush.msrb.mxu0 %v255_v38  ;;  %423 = vmatpush.msrb.mxu1 %v272_v39 }
  0x42   : > { %444 = vmatpush.msrb.mxu2 %v287_v40  ;;  %463 = vmatpush.msrb.mxu3 %v304_v41 }
  0x43   : > { %370 = vmatmul.f32.vlgmr.msra.gmra.mxu2 %v180_v42  ;;  %405 = vmatpush.msrb.mxu0 %v254_v43 }
  0x44   : > { %424 = vmatpush.msrb.mxu1 %v271_v44  ;;  %445 = vmatpush.msrb.mxu2 %v286_v45 }
  0x45   : > { %464 = vmatpush.msrb.mxu3 %v303_v46  ;;  %330 = vmatmul.f32.vlgmr.msra.gmra.mxu0 %v178_v47 }
  0x46   : > { %390 = vmatmul.f32.vlgmr.msra.gmra.mxu3 %v181_v48  ;;  %406 = vmatpush.msrb.mxu0 %v253_v49 }
  0x47   : > { %425 = vmatpush.msrb.mxu1 %v270_v50  ;;  %446 = vmatpush.msrb.mxu2 %v285_v51 }
  0x48   : > { %465 = vmatpush.msrb.mxu3 %v302_v52  ;;  %350 = vmatmul.f32.vlgmr.msra.gmra.mxu1 %v179_v53 }
  0x49   : > { %407 = vmatpush.msrb.mxu0 %v252_v54  ;;  %426 = vmatpush.msrb.mxu1 %v269_v55 }
  0x4a   : > { %447 = vmatpush.msrb.mxu2 %v284_v56  ;;  %466 = vmatpush.msrb.mxu3 %v301_v57 }
  0x4b   : > { %408 = vmatpush.msrb.mxu0 %v251_v58  ;;  %427 = vmatpush.msrb.mxu1 %v268_v59 }
  0x4c   : > { %448 = vmatpush.msrb.mxu2 %v283_v60  ;;  %467 = vmatpush.msrb.mxu3 %v300_v61 }
  0x4d   : > { %409 = vmatpush.msrb.mxu0 %v250_v62  ;;  %428 = vmatpush.msrb.mxu1 %v267_v63 }
  0x4e   : > { %449 = vmatpush.msrb.mxu2 %v282_v0  ;;  %468 = vmatpush.msrb.mxu3 %v299_v1 }
  0x4f   : > { %410 = vmatmul.f32.vlgmr.msrb.gmra.mxu0 %v182_v2  ;;  %450 = vmatmul.f32.vlgmr.msrb.gmra.mxu2 %v184_v3 }
  0x50   : > { %429 = vmatpush.msrb.mxu1 %v266_v4  ;;  %469 = vmatpush.msrb.mxu3 %v298_v5 }
  0x51   : > { %430 = vmatmul.f32.vlgmr.msrb.gmra.mxu1 %v183_v6  ;;  %470 = vmatmul.f32.vlgmr.msrb.gmra.mxu3 %v185_v7 }
  0xc2   : > { %v331_v8 = vpop.f32.mrf.mxu0 }
  0xc5   : > { %v351_v9 = vpop.f32.mrf.mxu1 }
  0xc6   : > { %v352_v10 = vadd.f32 %v351_v9, %v331_v8  ;;  %v371_v11 = vpop.f32.mrf.mxu2 }
  0xc8   : > { %v372_v12 = vadd.f32 %v371_v11, %v352_v10 }
  0xc9   : > { %v391_v13 = vpop.f32.mrf.mxu3 }
  0xca   : > { %v392_v14 = vadd.f32 %v391_v13, %v372_v12 }
  0xcc   : > { %v411_v15 = vpop.f32.mrf.mxu0 }
  0xcd   : > { %v412_v16 = vadd.f32 %v411_v15, %v392_v14 }
  0xce   : > { %v431_v17 = vpop.f32.mrf.mxu1 }
  0xcf   : > { %v432_v18 = vadd.f32 %v431_v17, %v412_v16 }
  0xd2   : > { %v451_v19 = vpop.f32.mrf.mxu2 }
  0xd3   : > { %v452_v20 = vadd.f32 %v451_v19, %v432_v18 }
  0xd4   : > { %v471_v21 = vpop.f32.mrf.mxu3 }
  0xd5   : > { %v472_v22 = vadd.f32 %v471_v21, %v452_v20 }
  0xd7   : > { %v474_v23 = vmul.f32 0.00390625, %v472_v22 }
  0xd9   : > { %476 = vst.msk [vmem:[%s177_s13] sm:$0xff] %vm475_vm0, %v474_v23 }
  0xda PF: > { %s12_s11 = sadd.s32 1, %s611_s11   ;;  %s1068_s9 = smov %s607_s10 }
  0xdb   : > { %p9_p5 = scmp.ge.s32.totalorder %s12_s11, 4   ;;  %s1069_s10 = smov %s1071_s12 }
  0xdd   :  { %11 = sbr.rel (!%p9_p5) target bundleno = 2 (0x2), region = 58 }

</bundles_post_ra>
